<compile_context>
chip_gen: v7x
topology: tpu7x:2x2x1
jax: 0.10.0
libtpu: 0.0.40
codegen_flags: <defaults>
</compile_context>

<pallas_src>
import functools

import jax
import jax.numpy as jnp
from jax.experimental import pallas as pl
from jax.experimental.pallas import tpu as pltpu

DROPOUT_RATE = 0.1
HIDDEN_DIM1 = 800
HIDDEN_DIM2 = 400
LATENT_DIM = 20
LEAKY_SLOPE = 0.01      # torch.nn.LeakyReLU default negative_slope
HEAD_PAD = 128          # lane-pad the fused mean||log_var head to a full vreg width


def _leaky_relu(x):
    return jnp.where(x >= 0, x, LEAKY_SLOPE * x)


def encoder_kernel(x_ref, w1_ref, b1_ref, w2_ref, b2_ref, wh_ref, bh_ref,
                   *rest, use_dropout):
    """One batch tile: 3 matmuls (layer1, layer2, fused mean||log_var head)."""
    if use_dropout:
        m1_ref, m2_ref, out_ref = rest
    else:
        (out_ref,) = rest

    cdt = w1_ref.dtype  # MXU input dtype (bf16 by default); accumulation is f32

    # FC_input + LeakyReLU (+ dropout)
    h = jnp.dot(x_ref[...].astype(cdt), w1_ref[...],
                preferred_element_type=jnp.float32)
    h = _leaky_relu(h + b1_ref[...])
    if use_dropout:
        h = h * m1_ref[...]          # mask already scaled by 1/(1-p)

    # FC_hidden + LeakyReLU (+ dropout)
    h = jnp.dot(h.astype(cdt), w2_ref[...],
                preferred_element_type=jnp.float32)
    h = _leaky_relu(h + b2_ref[...])
    if use_dropout:
        h = h * m2_ref[...]

    # Fused FC_mean || FC_var head (lane-padded to HEAD_PAD columns)
    out = jnp.dot(h.astype(cdt), wh_ref[...],
                  preferred_element_type=jnp.float32) + bh_ref[...]
    out_ref[...] = out.astype(out_ref.dtype)


def prepare_params(params, compute_dtype=jnp.bfloat16):
    """One-time layout prep (do NOT call per forward step).

    Torch layout (out, in) -> kernel layout (in, out); mean/var heads fused and
    lane-padded to a multiple of 128; matmul weights cast to compute_dtype,
    biases kept in f32.
    """
    latent = int(params["wm"].shape[0])
    head = max(HEAD_PAD, pl.cdiv(2 * latent, 128) * 128)
    pad = head - 2 * latent

    w1 = params["w1"].T.astype(compute_dtype)                       # (in, h1)
    w2 = params["w2"].T.astype(compute_dtype)                       # (h1, h2)
    wh = jnp.concatenate([params["wm"].T, params["wv"].T], axis=1)  # (h2, 2*latent)
    wh = jnp.pad(wh, ((0, 0), (0, pad))).astype(compute_dtype)      # (h2, head)

    b1 = params["b1"][None, :].astype(jnp.float32)
    b2 = params["b2"][None, :].astype(jnp.float32)
    bh = jnp.concatenate([params["bm"], params["bv"]])[None, :]
    bh = jnp.pad(bh, ((0, 0), (0, pad))).astype(jnp.float32)

    return dict(w1=w1, b1=b1, w2=w2, b2=b2, wh=wh, bh=bh,
                latent=latent, head=head)


def _choose_batch_tile(b):
    if b >= 512:
        return 256
    if b >= 256:
        return 128
    return max(8, ((b + 7) // 8) * 8)   # one tile covering the (padded) batch


def encoder_forward(prepped, x, key=None, *, dropout_rate=DROPOUT_RATE,
                    training=True):
    """Returns (mean, log_var). `prepped` comes from prepare_params()."""
    B, in_dim = x.shape
    latent, head = prepped["latent"], prepped["head"]
    h1 = prepped["w1"].shape[1]
    h2 = prepped["w2"].shape[1]

    use_dropout = bool(training) and dropout_rate > 0.0

    tile_b = _choose_batch_tile(B)
    b_pad = pl.cdiv(B, tile_b) * tile_b
    if b_pad != B:
        x = jnp.pad(x, ((0, b_pad - B), (0, 0)))
    grid = (b_pad // tile_b,)

    inputs = [x, prepped["w1"], prepped["b1"], prepped["w2"], prepped["b2"],
              prepped["wh"], prepped["bh"]]
    in_specs = [
        pl.BlockSpec((tile_b, in_dim), lambda i: (i, 0)),
        pl.BlockSpec((in_dim, h1), lambda i: (0, 0)),   # weights: constant index
        pl.BlockSpec((1, h1), lambda i: (0, 0)),        #   -> stay resident
        pl.BlockSpec((h1, h2), lambda i: (0, 0)),
        pl.BlockSpec((1, h2), lambda i: (0, 0)),
        pl.BlockSpec((h2, head), lambda i: (0, 0)),
        pl.BlockSpec((1, head), lambda i: (0, 0)),
    ]

    if use_dropout:
        if key is None:
            key = jax.random.PRNGKey(0)
        k1, k2 = jax.random.split(key)
        scale = 1.0 / (1.0 - dropout_rate)
        m1 = jax.random.bernoulli(k1, 1.0 - dropout_rate, (b_pad, h1))
        m2 = jax.random.bernoulli(k2, 1.0 - dropout_rate, (b_pad, h2))
        inputs += [m1.astype(jnp.float32) * scale, m2.astype(jnp.float32) * scale]
        in_specs += [
            pl.BlockSpec((tile_b, h1), lambda i: (i, 0)),
            pl.BlockSpec((tile_b, h2), lambda i: (i, 0)),
        ]

    flops = 2 * b_pad * (in_dim * h1 + h1 * h2 + h2 * head)
    bytes_w = sum(int(prepped[k].size) * prepped[k].dtype.itemsize
                  for k in ("w1", "b1", "w2", "b2", "wh", "bh"))
    bytes_a = int(x.size) * x.dtype.itemsize + b_pad * head * 4
    if use_dropout:
        bytes_a += b_pad * (h1 + h2) * 4
    cost = pl.CostEstimate(flops=flops, transcendentals=0,
                           bytes_accessed=bytes_w + bytes_a)

    out = pl.pallas_call(
        functools.partial(encoder_kernel, use_dropout=use_dropout),
        grid=grid,
        in_specs=in_specs,
        out_specs=pl.BlockSpec((tile_b, head), lambda i: (i, 0)),
        out_shape=jax.ShapeDtypeStruct((b_pad, head), jnp.float32),
        compiler_params=pltpu.CompilerParams(dimension_semantics=("parallel",)),
        cost_estimate=cost,
    )(*inputs)

    mean = out[:B, :latent]
    log_var = out[:B, latent:2 * latent]
    return mean, log_var


def init_params(key, input_dim, h1, h2, latent):
    """Deterministic synthetic init, torch nn.Linear layout: weight (out, in)."""
    ks = jax.random.split(key, 8)

    def lin(kw, kb, fan_in, fan_out):
        bound = 1.0 / jnp.sqrt(fan_in)
        w = jax.random.uniform(kw, (fan_out, fan_in), jnp.float32, -bound, bound)
        b = jax.random.uniform(kb, (fan_out,), jnp.float32, -bound, bound)
        return w, b

    w1, b1 = lin(ks[0], ks[1], input_dim, h1)
    w2, b2 = lin(ks[2], ks[3], h1, h2)
    wm, bm = lin(ks[4], ks[5], h2, latent)
    wv, bv = lin(ks[6], ks[7], h2, latent)
    return dict(w1=w1, b1=b1, w2=w2, b2=b2, wm=wm, bm=bm, wv=wv, bv=bv)


def encoder_reference(params, x):
    """Pure-JAX eval-mode reference (no dropout) for correctness checking."""
    h = jax.nn.leaky_relu(x @ params["w1"].T + params["b1"], LEAKY_SLOPE)
    h = jax.nn.leaky_relu(h @ params["w2"].T + params["b2"], LEAKY_SLOPE)
    mean = h @ params["wm"].T + params["bm"]
    log_var = h @ params["wv"].T + params["bv"]
    return mean, log_var


if __name__ == "__main__":
    key = jax.random.PRNGKey(0)
    k_param, k_x, k_drop = jax.random.split(key, 3)

    batch = 8
    input_dim = 64  # small synthetic feature dim

    params = init_params(k_param, input_dim, HIDDEN_DIM1, HIDDEN_DIM2, LATENT_DIM)
    x = jax.random.normal(k_x, (batch, input_dim), dtype=jnp.float32)

    # 1) training-mode forward (bf16 matmul weights, dropout active)
    prepped_bf16 = prepare_params(params, compute_dtype=jnp.bfloat16)
    mean, log_var = encoder_forward(prepped_bf16, x, key=k_drop,
                                    dropout_rate=DROPOUT_RATE, training=True)
    jax.block_until_ready((mean, log_var))
    assert mean.shape == (batch, LATENT_DIM)
    assert log_var.shape == (batch, LATENT_DIM)
    assert bool(jnp.all(jnp.isfinite(mean))) and bool(jnp.all(jnp.isfinite(log_var)))

    # 2) eval-mode forward in f32 vs pure-JAX reference (layer-wiring check)
    prepped_f32 = prepare_params(params, compute_dtype=jnp.float32)
    mean_k, logv_k = encoder_forward(prepped_f32, x, training=False)
    mean_r, logv_r = encoder_reference(params, x)
    jax.block_until_ready((mean_k, logv_k))
    assert bool(jnp.allclose(mean_k, mean_r, atol=2e-2, rtol=2e-2))
    assert bool(jnp.allclose(logv_k, logv_r, atol=2e-2, rtol=2e-2))

    print("KERNEL_OK")
</pallas_src>

<mosaic_0001>
module attributes {stable_mosaic.version = 11 : i64} {
  func.func @encoder_kernel(%arg0: i32, %arg1: memref<8x64xf32, #tpu.memory_space<vmem>>, %arg2: memref<64x800xbf16, #tpu.memory_space<vmem>>, %arg3: memref<1x800xf32, #tpu.memory_space<vmem>>, %arg4: memref<800x400xbf16, #tpu.memory_space<vmem>>, %arg5: memref<1x400xf32, #tpu.memory_space<vmem>>, %arg6: memref<400x128xbf16, #tpu.memory_space<vmem>>, %arg7: memref<1x128xf32, #tpu.memory_space<vmem>>, %arg8: memref<8x800xf32, #tpu.memory_space<vmem>>, %arg9: memref<8x400xf32, #tpu.memory_space<vmem>>, %arg10: memref<8x128xf32, #tpu.memory_space<vmem>>) attributes {dimension_semantics = [#tpu.dimension_semantics<parallel>], iteration_bounds = array<i64: 1>, scalar_prefetch = 0 : i64, scratch_operands = 0 : i64, tpu.core_type = #tpu.core_type<tc>, window_params = [{transform_indices = @transform_0, window_bounds = array<i64: 8, 64>}, {pipeline_mode = #tpu.pipeline_mode<synchronous>, transform_indices = @transform_1, window_bounds = array<i64: 64, 800>}, {pipeline_mode = #tpu.pipeline_mode<synchronous>, transform_indices = @transform_2, window_bounds = array<i64: 1, 800>}, {pipeline_mode = #tpu.pipeline_mode<synchronous>, transform_indices = @transform_3, window_bounds = array<i64: 800, 400>}, {pipeline_mode = #tpu.pipeline_mode<synchronous>, transform_indices = @transform_4, window_bounds = array<i64: 1, 400>}, {pipeline_mode = #tpu.pipeline_mode<synchronous>, transform_indices = @transform_5, window_bounds = array<i64: 400, 128>}, {pipeline_mode = #tpu.pipeline_mode<synchronous>, transform_indices = @transform_6, window_bounds = array<i64: 1, 128>}, {transform_indices = @transform_7, window_bounds = array<i64: 8, 800>}, {transform_indices = @transform_8, window_bounds = array<i64: 8, 400>}, {transform_indices = @transform_9, window_bounds = array<i64: 8, 128>}]} {
    %c0 = arith.constant 0 : index
    %c0_0 = arith.constant 0 : index
    %0 = vector.load %arg1[%c0, %c0_0] : memref<8x64xf32, #tpu.memory_space<vmem>>, vector<8x64xf32>
    %1 = arith.truncf %0 : vector<8x64xf32> to vector<8x64xbf16>
    %c0_1 = arith.constant 0 : index
    %c0_2 = arith.constant 0 : index
    %2 = vector.load %arg2[%c0_1, %c0_2] : memref<64x800xbf16, #tpu.memory_space<vmem>>, vector<64x800xbf16>
    %cst = arith.constant dense<0.000000e+00> : vector<8x800xf32>
    %3 = tpu.matmul %1, %2, %cst {dimension_numbers = #tpu.dot_dimension_numbers<[1], [0], [0], [1], [0, 0, 1, 1], [], []>} : vector<8x64xbf16>, vector<64x800xbf16>, vector<8x800xf32> -> vector<8x800xf32>
    %c0_3 = arith.constant 0 : index
    %c0_4 = arith.constant 0 : index
    %4 = vector.load %arg3[%c0_3, %c0_4] : memref<1x800xf32, #tpu.memory_space<vmem>>, vector<1x800xf32>
    %5 = vector.broadcast %4 : vector<1x800xf32> to vector<8x800xf32>
    %6 = arith.addf %3, %5 : vector<8x800xf32>
    %cst_5 = arith.constant 0.000000e+00 : f32
    %7 = vector.broadcast %cst_5 : f32 to vector<8x800xf32>
    %8 = arith.cmpf oge, %6, %7 : vector<8x800xf32>
    %cst_6 = arith.constant 0.00999999977 : f32
    %9 = vector.broadcast %cst_6 : f32 to vector<8x800xf32>
    %10 = arith.mulf %9, %6 : vector<8x800xf32>
    %11 = arith.select %8, %6, %10 : vector<8x800xi1>, vector<8x800xf32>
    %c0_7 = arith.constant 0 : index
    %c0_8 = arith.constant 0 : index
    %12 = vector.load %arg8[%c0_7, %c0_8] : memref<8x800xf32, #tpu.memory_space<vmem>>, vector<8x800xf32>
    %13 = arith.mulf %11, %12 : vector<8x800xf32>
    %14 = arith.truncf %13 : vector<8x800xf32> to vector<8x800xbf16>
    %c0_9 = arith.constant 0 : index
    %c0_10 = arith.constant 0 : index
    %15 = vector.load %arg4[%c0_9, %c0_10] : memref<800x400xbf16, #tpu.memory_space<vmem>>, vector<800x400xbf16>
    %cst_11 = arith.constant dense<0.000000e+00> : vector<8x400xf32>
    %16 = tpu.matmul %14, %15, %cst_11 {dimension_numbers = #tpu.dot_dimension_numbers<[1], [0], [0], [1], [0, 0, 1, 1], [], []>} : vector<8x800xbf16>, vector<800x400xbf16>, vector<8x400xf32> -> vector<8x400xf32>
    %c0_12 = arith.constant 0 : index
    %c0_13 = arith.constant 0 : index
    %17 = vector.load %arg5[%c0_12, %c0_13] : memref<1x400xf32, #tpu.memory_space<vmem>>, vector<1x400xf32>
    %18 = vector.broadcast %17 : vector<1x400xf32> to vector<8x400xf32>
    %19 = arith.addf %16, %18 : vector<8x400xf32>
    %cst_14 = arith.constant 0.000000e+00 : f32
    %20 = vector.broadcast %cst_14 : f32 to vector<8x400xf32>
    %21 = arith.cmpf oge, %19, %20 : vector<8x400xf32>
    %cst_15 = arith.constant 0.00999999977 : f32
    %22 = vector.broadcast %cst_15 : f32 to vector<8x400xf32>
    %23 = arith.mulf %22, %19 : vector<8x400xf32>
    %24 = arith.select %21, %19, %23 : vector<8x400xi1>, vector<8x400xf32>
    %c0_16 = arith.constant 0 : index
    %c0_17 = arith.constant 0 : index
    %25 = vector.load %arg9[%c0_16, %c0_17] : memref<8x400xf32, #tpu.memory_space<vmem>>, vector<8x400xf32>
    %26 = arith.mulf %24, %25 : vector<8x400xf32>
    %27 = arith.truncf %26 : vector<8x400xf32> to vector<8x400xbf16>
    %c0_18 = arith.constant 0 : index
    %c0_19 = arith.constant 0 : index
    %28 = vector.load %arg6[%c0_18, %c0_19] : memref<400x128xbf16, #tpu.memory_space<vmem>>, vector<400x128xbf16>
    %cst_20 = arith.constant dense<0.000000e+00> : vector<8x128xf32>
    %29 = tpu.matmul %27, %28, %cst_20 {dimension_numbers = #tpu.dot_dimension_numbers<[1], [0], [0], [1], [0, 0, 1, 1], [], []>} : vector<8x400xbf16>, vector<400x128xbf16>, vector<8x128xf32> -> vector<8x128xf32>
    %c0_21 = arith.constant 0 : index
    %c0_22 = arith.constant 0 : index
    %30 = vector.load %arg7[%c0_21, %c0_22] : memref<1x128xf32, #tpu.memory_space<vmem>>, vector<1x128xf32>
    %31 = vector.broadcast %30 : vector<1x128xf32> to vector<8x128xf32>
    %32 = arith.addf %29, %31 : vector<8x128xf32>
    %c0_23 = arith.constant 0 : index
    %c0_24 = arith.constant 0 : index
    %33 = vector.load %arg10[%c0_23, %c0_24] : memref<8x128xf32, #tpu.memory_space<vmem>>, vector<8x128xf32>
    tpu.vector_store %arg10[%c0_23, %c0_24], %32 {strides = array<i32>} : memref<8x128xf32, #tpu.memory_space<vmem>>, vector<8x128xf32>,
    return
  }
  func.func @transform_0(%arg0: i32) -> (i32, i32) {
    %c0_i32 = arith.constant 0 : i32
    %c0_i32_0 = arith.constant 0 : i32
    return %arg0, %c0_i32 : i32, i32
  }
  func.func @transform_1(%arg0: i32) -> (i32, i32) {
    %c0_i32 = arith.constant 0 : i32
    %c0_i32_0 = arith.constant 0 : i32
    %c0_i32_1 = arith.constant 0 : i32
    return %c0_i32, %c0_i32_0 : i32, i32
  }
  func.func @transform_2(%arg0: i32) -> (i32, i32) {
    %c0_i32 = arith.constant 0 : i32
    %c0_i32_0 = arith.constant 0 : i32
    %c0_i32_1 = arith.constant 0 : i32
    return %c0_i32, %c0_i32_0 : i32, i32
  }
  func.func @transform_3(%arg0: i32) -> (i32, i32) {
    %c0_i32 = arith.constant 0 : i32
    %c0_i32_0 = arith.constant 0 : i32
    %c0_i32_1 = arith.constant 0 : i32
    return %c0_i32, %c0_i32_0 : i32, i32
  }
  func.func @transform_4(%arg0: i32) -> (i32, i32) {
    %c0_i32 = arith.constant 0 : i32
    %c0_i32_0 = arith.constant 0 : i32
    %c0_i32_1 = arith.constant 0 : i32
    return %c0_i32, %c0_i32_0 : i32, i32
  }
  func.func @transform_5(%arg0: i32) -> (i32, i32) {
    %c0_i32 = arith.constant 0 : i32
    %c0_i32_0 = arith.constant 0 : i32
    %c0_i32_1 = arith.constant 0 : i32
    return %c0_i32, %c0_i32_0 : i32, i32
  }
  func.func @transform_6(%arg0: i32) -> (i32, i32) {
    %c0_i32 = arith.constant 0 : i32
    %c0_i32_0 = arith.constant 0 : i32
    %c0_i32_1 = arith.constant 0 : i32
    return %c0_i32, %c0_i32_0 : i32, i32
  }
  func.func @transform_7(%arg0: i32) -> (i32, i32) {
    %c0_i32 = arith.constant 0 : i32
    %c0_i32_0 = arith.constant 0 : i32
    return %arg0, %c0_i32 : i32, i32
  }
  func.func @transform_8(%arg0: i32) -> (i32, i32) {
    %c0_i32 = arith.constant 0 : i32
    %c0_i32_0 = arith.constant 0 : i32
    return %arg0, %c0_i32 : i32, i32
  }
  func.func @transform_9(%arg0: i32) -> (i32, i32) {
    %c0_i32 = arith.constant 0 : i32
    %c0_i32_0 = arith.constant 0 : i32
    return %arg0, %c0_i32 : i32, i32
  }
}

</mosaic_0001>

<bundles_post_ra>
// kernel: tpu_custom_call.1
= control target key start
LH: loop header
LB: loop body
LE: loop exit
PB: predicated region body
PF: predicated region fallthrough
CT: control target
= control target key end

     0   :  { %v3063_v2 = vmov 0   ;;  %vm249_vm0 = vcmask 523264   ;;  %v3064_v25 = vmov 0.0   ;;  %vm3065_vm1 = vmmov 0   ;;  %s3997_s0 = inlined_call_operand.vmem [shape: f32[8,64], index: 0, kind: input, shape index: {}]   ;;  %s3998_s1 = inlined_call_operand.vmem [shape: bf16[64,800], index: 1, kind: input, shape index: {}]   ;;  %s3999_s2 = inlined_call_operand.vmem [shape: f32[1,800], index: 2, kind: input, shape index: {}]   ;;  %s4000_s3 = inlined_call_operand.vmem [shape: bf16[800,400], index: 3, kind: input, shape index: {}]   ;;  %s4001_s4 = inlined_call_operand.vmem [shape: f32[1,400], index: 4, kind: input, shape index: {}]   ;;  %s4002_s5 = inlined_call_operand.vmem [shape: bf16[400,128], index: 5, kind: input, shape index: {}]   ;;  %s4003_s6 = inlined_call_operand.vmem [shape: f32[1,128], index: 6, kind: input, shape index: {}]   ;;  %s4004_s7 = inlined_call_operand.vmem [shape: f32[8,800], index: 7, kind: input, shape index: {}]   ;;  %s4005_s8 = inlined_call_operand.vmem [shape: f32[8,400], index: 8, kind: input, shape index: {}]   ;;  %s4006_s9 = inlined_call_operand.hbm [shape: f32[8,128], index: 9, kind: output, shape index: {}]  }
   0x1   :  { %v2674_v0 = vld [vmem:[%s3998_s1 + $0x4] ss:$28 sps:$4 sm:$0xff]   ;;  %285 = vmatprep.mubr.bf16.mxu0 %v3063_v2  ;;  %326 = vmatprep.mubr.bf16.mxu1 %v3063_v2  ;;  %v2677_v3 = vld [vmem:[%s3998_s1 + $0x3c] ss:$28 sps:$4 sm:$0xff]   ;;  %v2680_v5 = vld [vmem:[%s3998_s1 + $0x74] ss:$28 sps:$4 sm:$0xff]  }
   0x2   :  { %v2676_v1 = vld [vmem:[%s3998_s1] ss:$28 sps:$4 sm:$0xff]   ;;  %253 = vmatprep.subr.bf16.mxu0 %v2674_v0  ;;  %v2679_v4 = vld [vmem:[%s3998_s1 + $0x38] ss:$28 sps:$4 sm:$0xff]   ;;  %v2682_v6 = vld [vmem:[%s3998_s1 + $0x70] ss:$28 sps:$4 sm:$0xff]  }
   0x3   :  { %254 = vmatpush1.bf16.msra.mxu0 %v2676_v1  ;;  %v2686_v7 = vld [vmem:[%s3998_s1 + $0xc] ss:$28 sps:$4 sm:$0xff]   ;;  %v2689_v9 = vld [vmem:[%s3998_s1 + $0x44] ss:$28 sps:$4 sm:$0xff]   ;;  %v2692_v13 = vld [vmem:[%s3998_s1 + $0x7c] ss:$28 sps:$4 sm:$0xff]  }
   0x4   :  { %255 = vmatprep.subr.bf16.mxu0 %v2677_v3  ;;  %v2688_v8 = vld [vmem:[%s3998_s1 + $0x8] ss:$28 sps:$4 sm:$0xff]   ;;  %294 = vmatprep.subr.bf16.mxu1 %v2686_v7  ;;  %v2691_v11 = vld [vmem:[%s3998_s1 + $0x40] ss:$28 sps:$4 sm:$0xff]   ;;  %v2700_v15 = vld [vmem:[%s3998_s1 + $0x14] ss:$28 sps:$4 sm:$0xff]  }
   0x5   :  { %v2683_v10 = vld [vmem:[%s3998_s1 + $0xac] ss:$28 sps:$4 sm:$0xff]   ;;  %295 = vmatpush1.bf16.msra.mxu1 %v2688_v8  ;;  %v34_v14 = vld [vmem:[%s3997_s0] sm:$0xff]  ;;  %v2694_v16 = vld [vmem:[%s3998_s1 + $0x78] ss:$28 sps:$4 sm:$0xff]  }
   0x6   :  { %v2685_v12 = vld [vmem:[%s3998_s1 + $0xa8] ss:$28 sps:$4 sm:$0xff]   ;;  %296 = vmatprep.subr.bf16.mxu1 %v2689_v9  ;;  %v35_v17 = vpack.c.bf16 %v34_v14, %v34_v14  ;;  %v2695_v18 = vld [vmem:[%s3998_s1 + $0xb4] ss:$28 sps:$4 sm:$0xff]   ;;  %v2704_v26 = vld [vmem:[%s3998_s1 + $0x80] ss:$28 sps:$4 sm:$0xff]  }
   0x7   :  { %256 = vmatpush1.bf16.msra.mxu0 %v2679_v4  ;;  %v2698_v19 = vld [vmem:[%s3998_s1 + $0x10] ss:$28 sps:$4 sm:$0xff]   ;;  %v2701_v22 = vld [vmem:[%s3998_s1 + $0x48] ss:$28 sps:$4 sm:$0xff]   ;;  %v2710_v24 = vld [vmem:[%s3998_s1 + $0x18] ss:$28 sps:$4 sm:$0xff]  }
   0x8   :  { %257 = vmatprep.subr.bf16.mxu0 %v2680_v5  ;;  %v2703_v20 = vld [vmem:[%s3998_s1 + $0x4c] ss:$28 sps:$4 sm:$0xff]   ;;  %v2706_v23 = vld [vmem:[%s3998_s1 + $0x84] ss:$28 sps:$4 sm:$0xff]   ;;  %v2709_v27 = vld [vmem:[%s3998_s1 + $0xbc] ss:$28 sps:$4 sm:$0xff]  }
   0x9   :  { %297 = vmatpush1.bf16.msra.mxu1 %v2691_v11  ;;  %v2697_v21 = vld [vmem:[%s3998_s1 + $0xb0] ss:$28 sps:$4 sm:$0xff]   ;;  %v2707_v29 = vld [vmem:[%s3998_s1 + $0xb8] ss:$28 sps:$4 sm:$0xff]   ;;  %v2712_v31 = vld [vmem:[%s3998_s1 + $0x88] ss:$28 sps:$4 sm:$0xff]  }
   0xa   :  { %298 = vmatprep.subr.bf16.mxu1 %v2692_v13  ;;  %v2711_v28 = vld [vmem:[%s3998_s1 + $0x50] ss:$28 sps:$4 sm:$0xff]   ;;  %v2716_v30 = vld [vmem:[%s4000_s3 + $0x4] ss:$16 sps:$4 sm:$0xff]   ;;  %v2713_v34 = vld [vmem:[%s3998_s1 + $0xc0] ss:$28 sps:$4 sm:$0xff]  }
   0xb   :  { %258 = vmatpush1.bf16.msra.mxu0 %v2682_v6  ;;  %v2714_v32 = vld [vmem:[%s4000_s3] ss:$16 sps:$4 sm:$0xff]   ;;  %v2722_v33 = vld [vmem:[%s4000_s3 + $0x24] ss:$16 sps:$4 sm:$0xff]   ;;  %v2719_v35 = vld [vmem:[%s4000_s3 + $0xc] ss:$16 sps:$4 sm:$0xff]  }
   0xc   :  { %259 = vmatprep.subr.bf16.mxu0 %v2683_v10  ;;  %v2720_v36 = vld [vmem:[%s4000_s3 + $0x20] ss:$16 sps:$4 sm:$0xff]   ;;  %v2728_v37 = vld [vmem:[%s4000_s3 + $0x44] ss:$16 sps:$4 sm:$0xff]   ;;  %v2717_v38 = vld [vmem:[%s4000_s3 + $0x8] ss:$16 sps:$4 sm:$0xff]  }
   0xd   :  { %299 = vmatpush1.bf16.msra.mxu1 %v2694_v16  ;;  %v2725_v39 = vld [vmem:[%s4000_s3 + $0x2c] ss:$16 sps:$4 sm:$0xff]   ;;  %v2726_v40 = vld [vmem:[%s4000_s3 + $0x40] ss:$16 sps:$4 sm:$0xff]   ;;  %v2734_v41 = vld [vmem:[%s4000_s3 + $0x64] ss:$16 sps:$4 sm:$0xff]  }
   0xe   :  { %300 = vmatprep.subr.bf16.mxu1 %v2695_v18  ;;  %v2723_v42 = vld [vmem:[%s4000_s3 + $0x28] ss:$16 sps:$4 sm:$0xff]   ;;  %v2731_v43 = vld [vmem:[%s4000_s3 + $0x4c] ss:$16 sps:$4 sm:$0xff]   ;;  %v2732_v44 = vld [vmem:[%s4000_s3 + $0x60] ss:$16 sps:$4 sm:$0xff]  }
   0xf   :  { %260 = vmatpush1.bf16.msra.mxu0 %v2685_v12  ;;  %v2740_v45 = vld [vmem:[%s4000_s3 + $0x84] ss:$16 sps:$4 sm:$0xff]   ;;  %v2729_v46 = vld [vmem:[%s4000_s3 + $0x48] ss:$16 sps:$4 sm:$0xff]   ;;  %v2737_v47 = vld [vmem:[%s4000_s3 + $0x6c] ss:$16 sps:$4 sm:$0xff]  }
  0x10   :  { %335 = vmatprep.subr.bf16.mxu0 %v2700_v15  ;;  %v2738_v48 = vld [vmem:[%s4000_s3 + $0x80] ss:$16 sps:$4 sm:$0xff]   ;;  %v2746_v49 = vld [vmem:[%s4000_s3 + $0xa4] ss:$16 sps:$4 sm:$0xff]   ;;  %v2735_v50 = vld [vmem:[%s4000_s3 + $0x68] ss:$16 sps:$4 sm:$0xff]  }
  0x11   :  { %301 = vmatpush1.bf16.msra.mxu1 %v2697_v21  ;;  %v2743_v51 = vld [vmem:[%s4000_s3 + $0x8c] ss:$16 sps:$4 sm:$0xff]   ;;  %v2744_v52 = vld [vmem:[%s4000_s3 + $0xa0] ss:$16 sps:$4 sm:$0xff]   ;;  %v2752_v53 = vld [vmem:[%s4000_s3 + $0xc4] ss:$16 sps:$4 sm:$0xff]  }
  0x12   :  { %2370 = vmatmul.mubr.msk.bf16.vlgmr.msra.gmra.mrb[0].mxu0 %vm249_vm0, %v35_v17  ;;  %2630 = vmatprep.subr.bf16.mxu1 %v3064_v25  ;;  %v2741_v54 = vld [vmem:[%s4000_s3 + $0x88] ss:$16 sps:$4 sm:$0xff]   ;;  %v2749_v55 = vld [vmem:[%s4000_s3 + $0xac] ss:$16 sps:$4 sm:$0xff]   ;;  %v2750_v56 = vld [vmem:[%s4000_s3 + $0xc0] ss:$16 sps:$4 sm:$0xff]  }
  0x13   :  { %336 = vmatpush1.bf16.msra.mxu0 %v2698_v19  ;;  %367 = vmatprep.mubr.bf16.mxu0 %v3063_v2  ;;  %v2758_v57 = vld [vmem:[%s4000_s3 + $0xe4] ss:$16 sps:$4 sm:$0xff]   ;;  %v2747_v58 = vld [vmem:[%s4000_s3 + $0xa8] ss:$16 sps:$4 sm:$0xff]   ;;  %v2755_v59 = vld [vmem:[%s4000_s3 + $0xcc] ss:$16 sps:$4 sm:$0xff]  }
  0x14   :  { %337 = vmatprep.subr.bf16.mxu0 %v2703_v20  ;;  %2371 = vmatmul.mubr.msk.bf16.vlgmr.msra.gmra.mrb[0].mxu1 %vm249_vm0, %v35_v17  ;;  %v2756_v60 = vld [vmem:[%s4000_s3 + $0xe0] ss:$16 sps:$4 sm:$0xff]   ;;  %v2764_v61 = vld [vmem:[%s4000_s3 + $0x104] ss:$16 sps:$4 sm:$0xff]   ;;  %v2753_v62 = vld [vmem:[%s4000_s3 + $0xc8] ss:$16 sps:$4 sm:$0xff]  }
  0x15   :  { %2631 = vmatpush3.bf16.msra.mxu1 %v2710_v24  ;;  %2638 = vmatprep.mubr.msk.bf16.mxu1 %vm3065_vm1, %v3064_v25  ;;  %v2761_v63 = vld [vmem:[%s4000_s3 + $0xec] ss:$16 sps:$4 sm:$0xff]   ;;  %v2762_v0 = vld [vmem:[%s4000_s3 + $0x100] ss:$16 sps:$4 sm:$0xff]   ;;  %v2770_v1 = vld [vmem:[%s4000_s3 + $0x124] ss:$16 sps:$4 sm:$0xff]  }
  0x16   :  { %2632 = vmatprep.subr.bf16.mxu1 %v3064_v25  ;;  %v2759_v3 = vld [vmem:[%s4000_s3 + $0xe8] ss:$16 sps:$4 sm:$0xff]   ;;  %v2767_v4 = vld [vmem:[%s4000_s3 + $0x10c] ss:$16 sps:$4 sm:$0xff]   ;;  %v2768_v5 = vld [vmem:[%s4000_s3 + $0x120] ss:$16 sps:$4 sm:$0xff]  }
  0x17   :  { %338 = vmatpush1.bf16.msra.mxu0 %v2701_v22  ;;  %v2776_v6 = vld [vmem:[%s4000_s3 + $0x144] ss:$16 sps:$4 sm:$0xff]   ;;  %v2765_v7 = vld [vmem:[%s4000_s3 + $0x108] ss:$16 sps:$4 sm:$0xff]   ;;  %v2773_v8 = vld [vmem:[%s4000_s3 + $0x12c] ss:$16 sps:$4 sm:$0xff]  }
  0x18   :  { %339 = vmatprep.subr.bf16.mxu0 %v2706_v23  ;;  %v2774_v9 = vld [vmem:[%s4000_s3 + $0x140] ss:$16 sps:$4 sm:$0xff]   ;;  %v2782_v10 = vld [vmem:[%s4000_s3 + $0x164] ss:$16 sps:$4 sm:$0xff]   ;;  %v2771_v11 = vld [vmem:[%s4000_s3 + $0x128] ss:$16 sps:$4 sm:$0xff]  }
  0x19   :  { %2633 = vmatpush3.bf16.msra.mxu1 %v2711_v28  ;;  %v2779_v12 = vld [vmem:[%s4000_s3 + $0x14c] ss:$16 sps:$4 sm:$0xff]   ;;  %v2780_v13 = vld [vmem:[%s4000_s3 + $0x160] ss:$16 sps:$4 sm:$0xff]   ;;  %v2788_v14 = vld [vmem:[%s4000_s3 + $0x184] ss:$16 sps:$4 sm:$0xff]  }
  0x1a   :  { %2634 = vmatprep.subr.bf16.mxu1 %v3064_v25  ;;  %v2777_v15 = vld [vmem:[%s4000_s3 + $0x148] ss:$16 sps:$4 sm:$0xff]   ;;  %v2785_v16 = vld [vmem:[%s4000_s3 + $0x16c] ss:$16 sps:$4 sm:$0xff]   ;;  %v2794_v18 = vld [vmem:[%s4000_s3 + $0x1a4] ss:$16 sps:$4 sm:$0xff]  }
  0x1b   :  { %340 = vmatpush1.bf16.msra.mxu0 %v2704_v26  ;;  %v2783_v19 = vld [vmem:[%s4000_s3 + $0x168] ss:$16 sps:$4 sm:$0xff]   ;;  %v2791_v20 = vld [vmem:[%s4000_s3 + $0x18c] ss:$16 sps:$4 sm:$0xff]   ;;  %v2792_v21 = vld [vmem:[%s4000_s3 + $0x1a0] ss:$16 sps:$4 sm:$0xff]  }
  0x1c   :  { %341 = vmatprep.subr.bf16.mxu0 %v2709_v27  ;;  %v2789_v22 = vld [vmem:[%s4000_s3 + $0x188] ss:$16 sps:$4 sm:$0xff]   ;;  %v2797_v23 = vld [vmem:[%s4000_s3 + $0x1ac] ss:$16 sps:$4 sm:$0xff]   ;;  %v2798_v27 = vld [vmem:[%s4000_s3 + $0x1c0] ss:$16 sps:$4 sm:$0xff]  }
  0x1d   :  { %2635 = vmatpush3.bf16.msra.mxu1 %v2712_v31  ;;  %v2795_v24 = vld [vmem:[%s4000_s3 + $0x1a8] ss:$16 sps:$4 sm:$0xff]   ;;  %v2803_v26 = vld [vmem:[%s4000_s3 + $0x1cc] ss:$16 sps:$4 sm:$0xff]   ;;  %v2804_v31 = vld [vmem:[%s4000_s3 + $0x1e0] ss:$16 sps:$4 sm:$0xff]  }
  0x1e   :  { %2636 = vmatprep.subr.bf16.mxu1 %v3064_v25  ;;  %v2800_v25 = vld [vmem:[%s4000_s3 + $0x1c4] ss:$16 sps:$4 sm:$0xff]   ;;  %v2801_v28 = vld [vmem:[%s4000_s3 + $0x1c8] ss:$16 sps:$4 sm:$0xff]  }
  0x1f   :  { %342 = vmatpush1.bf16.msra.mxu0 %v2707_v29  ;;  %v2806_v29 = vld [vmem:[%s4000_s3 + $0x1e4] ss:$16 sps:$4 sm:$0xff]  }
  0x20   :  { %1684 = vmatprep.subr.bf16.mxu0 %v2716_v30  ;;  %v2809_v30 = vld [vmem:[%s4000_s3 + $0x1ec] ss:$16 sps:$4 sm:$0xff]  }
  0x21   :  { %2637 = vmatpush3.bf16.msra.mxu1 %v2713_v34  ;;  %v2815_v34 = vld [vmem:[%s4000_s3 + $0x20c] ss:$16 sps:$4 sm:$0xff]  }
  0x22   :  { %2372 = vmatmul.mubr.msk.bf16.vlgmr.msra.gmra.mrb[4].mxu0 %vm249_vm0, %v35_v17  ;;  %1848 = vmatprep.subr.bf16.mxu1 %v2719_v35 }
  0x23   :  { %1685 = vmatpush1.bf16.msra.mxu0 %v2714_v32  ;;  %v2807_v32 = vld [vmem:[%s4000_s3 + $0x1e8] ss:$16 sps:$4 sm:$0xff]  }
  0x24   :  { %1686 = vmatprep.subr.bf16.mxu0 %v2722_v33  ;;  %2639 = vmatmul.mubr.msk.bf16.vlgmr.msra.gmra.mrb[4].mxu1 %vm249_vm0, %v35_v17  ;;  %v2786_v17 = vld [vmem:[%s4000_s3 + $0x180] ss:$16 sps:$4 sm:$0xff]   ;;  %v2812_v33 = vld [vmem:[%s4000_s3 + $0x204] ss:$16 sps:$4 sm:$0xff]  }
  0x25   :  { %1849 = vmatpush1.bf16.msra.mxu1 %v2717_v38 }
  0x26   :  { %1850 = vmatprep.subr.bf16.mxu1 %v2725_v39 }
  0x27   :  { %1687 = vmatpush1.bf16.msra.mxu0 %v2720_v36 }
  0x28   :  { %1688 = vmatprep.subr.bf16.mxu0 %v2728_v37 }
  0x29   :  { %1851 = vmatpush1.bf16.msra.mxu1 %v2723_v42 }
  0x2a   :  { %1852 = vmatprep.subr.bf16.mxu1 %v2731_v43 }
  0x2b   :  { %1689 = vmatpush1.bf16.msra.mxu0 %v2726_v40 }
  0x2c   :  { %1690 = vmatprep.subr.bf16.mxu0 %v2734_v41 }
  0x2d   :  { %1853 = vmatpush1.bf16.msra.mxu1 %v2729_v46 }
  0x2e   :  { %1854 = vmatprep.subr.bf16.mxu1 %v2737_v47 }
  0x2f   :  { %1691 = vmatpush1.bf16.msra.mxu0 %v2732_v44 }
  0x30   :  { %1692 = vmatprep.subr.bf16.mxu0 %v2740_v45 }
  0x31   :  { %1855 = vmatpush1.bf16.msra.mxu1 %v2735_v50 }
  0x32   :  { %1856 = vmatprep.subr.bf16.mxu1 %v2743_v51 }
  0x33   :  { %1693 = vmatpush1.bf16.msra.mxu0 %v2738_v48 }
  0x34   :  { %1694 = vmatprep.subr.bf16.mxu0 %v2746_v49 }
  0x35   :  { %1857 = vmatpush1.bf16.msra.mxu1 %v2741_v54 }
  0x36   :  { %1858 = vmatprep.subr.bf16.mxu1 %v2749_v55 }
  0x37   :  { %1695 = vmatpush1.bf16.msra.mxu0 %v2744_v52 }
  0x38   :  { %1696 = vmatprep.subr.bf16.mxu0 %v2752_v53 }
  0x39   :  { %1859 = vmatpush1.bf16.msra.mxu1 %v2747_v58 }
  0x3a   :  { %1860 = vmatprep.subr.bf16.mxu1 %v2755_v59 }
  0x3b   :  { %1697 = vmatpush1.bf16.msra.mxu0 %v2750_v56 }
  0x3c   :  { %1698 = vmatprep.subr.bf16.mxu0 %v2758_v57 }
  0x3d   :  { %1861 = vmatpush1.bf16.msra.mxu1 %v2753_v62 }
  0x3e   :  { %1862 = vmatprep.subr.bf16.mxu1 %v2761_v63 }
  0x3f   :  { %1699 = vmatpush1.bf16.msra.mxu0 %v2756_v60 }
  0x40   :  { %1700 = vmatprep.subr.bf16.mxu0 %v2764_v61 }
  0x41   :  { %1863 = vmatpush1.bf16.msra.mxu1 %v2759_v3 }
  0x42   :  { %1864 = vmatprep.subr.bf16.mxu1 %v2767_v4 }
  0x43   :  { %1701 = vmatpush1.bf16.msra.mxu0 %v2762_v0 }
  0x44   :  { %1702 = vmatprep.subr.bf16.mxu0 %v2770_v1 }
  0x45   :  { %1865 = vmatpush1.bf16.msra.mxu1 %v2765_v7 }
  0x46   :  { %1866 = vmatprep.subr.bf16.mxu1 %v2773_v8 }
  0x47   :  { %1703 = vmatpush1.bf16.msra.mxu0 %v2768_v5 }
  0x48   :  { %1704 = vmatprep.subr.bf16.mxu0 %v2776_v6 }
  0x49   :  { %1867 = vmatpush1.bf16.msra.mxu1 %v2771_v11 }
  0x4a   :  { %1868 = vmatprep.subr.bf16.mxu1 %v2779_v12 }
  0x4b   :  { %1705 = vmatpush1.bf16.msra.mxu0 %v2774_v9 }
  0x4c   :  { %1706 = vmatprep.subr.bf16.mxu0 %v2782_v10 }
  0x4d   :  { %1869 = vmatpush1.bf16.msra.mxu1 %v2777_v15 }
  0x4e   :  { %1870 = vmatprep.subr.bf16.mxu1 %v2785_v16 }
  0x4f   :  { %1707 = vmatpush1.bf16.msra.mxu0 %v2780_v13 }
  0x50   :  { %1708 = vmatprep.subr.bf16.mxu0 %v2788_v14 }
  0x51   :  { %1871 = vmatpush1.bf16.msra.mxu1 %v2783_v19 }
  0x52   :  { %1872 = vmatprep.subr.bf16.mxu1 %v2791_v20 }
  0x53   :  { %1709 = vmatpush1.bf16.msra.mxu0 %v2786_v17 }
  0x54   :  { %1710 = vmatprep.subr.bf16.mxu0 %v2794_v18 }
  0x55   :  { %1873 = vmatpush1.bf16.msra.mxu1 %v2789_v22 }
  0x56   :  { %1874 = vmatprep.subr.bf16.mxu1 %v2797_v23 }
  0x57   :  { %1711 = vmatpush1.bf16.msra.mxu0 %v2792_v21 }
  0x58   :  { %1712 = vmatprep.subr.bf16.mxu0 %v2800_v25 }
  0x59   :  { %1875 = vmatpush1.bf16.msra.mxu1 %v2795_v24 }
  0x5a   :  { %1876 = vmatprep.subr.bf16.mxu1 %v2803_v26 }
  0x5b   :  { %1713 = vmatpush1.bf16.msra.mxu0 %v2798_v27 }
  0x5c   :  { %1714 = vmatprep.subr.bf16.mxu0 %v2806_v29 }
  0x5d   :  { %1877 = vmatpush1.bf16.msra.mxu1 %v2801_v28 }
  0x5e   :  { %1878 = vmatprep.subr.bf16.mxu1 %v2809_v30 }
  0x5f   :  { %1715 = vmatpush1.bf16.msra.mxu0 %v2804_v31 }
  0x60   :  { %1725 = vmatprep.subr.bf16.mxu0 %v2812_v33 }
  0x61   :  { %1879 = vmatpush1.bf16.msra.mxu1 %v2807_v32 }
  0x62   :  { %1889 = vmatprep.subr.bf16.mxu1 %v2815_v34 }
  0x63   :  { %14 = vsyncpa [#allocation3], 0  ;;  %v70_v35 = vlaneseq  ;;  %v3415_v38 = vld [vmem:[%s3999_s2] sm:$0x7f]  ;;  %v438_v52 = vld [vmem:[%s4004_s7 + $0x8] sm:$0xff]  ;;  %vm1680_vm9 = vcmask 261120  }
  0x64   :  { %v437_v49 = vld [vmem:[%s4004_s7] sm:$0xff]  ;;  %v2813_v0 = vld [vmem:[%s4000_s3 + $0x208] ss:$16 sps:$4 sm:$0xff]   ;;  %v2821_v5 = vld [vmem:[%s4000_s3 + $0x22c] ss:$16 sps:$4 sm:$0xff]   ;;  %vm2243_vm14 = vcmask 130048  }
  0x65   :  { %v3409_v36 = vshrl.u32 %v70_v35, 7  ;;  %v2810_v60 = vld [vmem:[%s4000_s3 + $0x200] ss:$16 sps:$4 sm:$0xff]   ;;  %v2818_v1 = vld [vmem:[%s4000_s3 + $0x224] ss:$16 sps:$4 sm:$0xff]   ;;  %v440_v7 = vld [vmem:[%s4004_s7 + $0x18] sm:$0xff] }
  0x66   :  { %v2816_v9 = vld [vmem:[%s4000_s3 + $0x220] ss:$16 sps:$4 sm:$0xff]   ;;  %v2819_v10 = vld [vmem:[%s4000_s3 + $0x228] ss:$16 sps:$4 sm:$0xff]   ;;  %v2824_v12 = vld [vmem:[%s4000_s3 + $0x244] ss:$16 sps:$4 sm:$0xff]  }
  0x67   :  { %v72_v37 = vsub.s32 0, %v3409_v36  ;;  %v76_v39 = vsub.s32 1, %v3409_v36  ;;  %v84_v43 = vsub.s32 3, %v3409_v36  ;;  %v2827_v13 = vld [vmem:[%s4000_s3 + $0x24c] ss:$16 sps:$4 sm:$0xff]   ;;  %s3066_s19 = smov [#allocation2]  }
  0x68   :  { %v2822_v16 = vld [vmem:[%s4000_s3 + $0x240] ss:$16 sps:$4 sm:$0xff]   ;;  %v2825_v17 = vld [vmem:[%s4000_s3 + $0x248] ss:$16 sps:$4 sm:$0xff]   ;;  %v2830_v19 = vld [vmem:[%s4000_s3 + $0x264] ss:$16 sps:$4 sm:$0xff]  }
  0x69   :  { %v73_v40 = vrot.slane %v3415_v38, %v72_v37  ;;  %v77_v41 = vrot.slane %v3415_v38, %v76_v39  ;;  %v85_v53 = vrot.slane %v3415_v38, %v84_v43  ;;  %v2833_v20 = vld [vmem:[%s4000_s3 + $0x26c] ss:$16 sps:$4 sm:$0xff]   ;;  %v2828_v23 = vld [vmem:[%s4000_s3 + $0x260] ss:$16 sps:$4 sm:$0xff]   ;;  %v2831_v24 = vld [vmem:[%s4000_s3 + $0x268] ss:$16 sps:$4 sm:$0xff]  }
  0x6a   :  { %v2836_v25 = vld [vmem:[%s4000_s3 + $0x284] ss:$16 sps:$4 sm:$0xff]   ;;  %v2839_v26 = vld [vmem:[%s4000_s3 + $0x28c] ss:$16 sps:$4 sm:$0xff]   ;;  %v2834_v30 = vld [vmem:[%s4000_s3 + $0x280] ss:$16 sps:$4 sm:$0xff]  }
  0x6b   :  { %v2837_v31 = vld [vmem:[%s4000_s3 + $0x288] ss:$16 sps:$4 sm:$0xff]   ;;  %v2842_v33 = vld [vmem:[%s4000_s3 + $0x2a4] ss:$16 sps:$4 sm:$0xff]   ;;  %v2845_v34 = vld [vmem:[%s4000_s3 + $0x2ac] ss:$16 sps:$4 sm:$0xff]  }
  0x6c   :  { %v2840_v35 = vld [vmem:[%s4000_s3 + $0x2a0] ss:$16 sps:$4 sm:$0xff]   ;;  %s2334_s2 = sshll.u32 %s3066_s19, 4  ;;  %s2335_s2 = int_to_ptr.vmem [resolvable:$true] %s2334_s2 }
  0x6d   :  { %s3039_s20 = scalar_lea.vmem %s2335_s2, 128  ;;  %p3044_p1 = scmp.lt.s32.totalorder %s2335_s2, %s2335_s2 }
  0x6e   :  { %p3040_p0 = scmp.ne.s32.totalorder %s2335_s2, %s3039_s20  ;;  %p3045_p2 = scmp.lt.s32.totalorder %s3039_s20, %s3039_s20 }
  0x70   :  { %p3046_p3 = por %p3045_p2, %p3044_p1 }
  0x72   :  { %p3047_p4 = pnand %p3046_p3, %p3040_p0 }
  0xe5   :  { %v287_v42 = vpop.f32.mrb[0].mxu0 }
  0xe6   :  { %v288_v44 = vadd.f32 %v287_v42, %v73_v40  ;;  %v289_v45 = vpop.f32.mrb[1].mxu0  ;;  %v2843_v40 = vld [vmem:[%s4000_s3 + $0x2a8] ss:$16 sps:$4 sm:$0xff]   ;;  %v2851_v42 = vld [vmem:[%s4000_s3 + $0x2cc] ss:$16 sps:$4 sm:$0xff]  }
  0xe7   :  { %v290_v46 = vadd.f32 %v289_v45, %v77_v41  ;;  %v291_v47 = vpop.f32.mrb[2].mxu0  ;;  %v3434_v57 = vpop.f32.mrb[0].mxu1  ;;  %v2848_v41 = vld [vmem:[%s4000_s3 + $0x2c4] ss:$16 sps:$4 sm:$0xff]   ;;  %v2849_v45 = vld [vmem:[%s4000_s3 + $0x2c8] ss:$16 sps:$4 sm:$0xff]  }
  0xe8   :  { %vm416_vm2 = vcmp.ge.f32.partialorder %v288_v44, 0.0  ;;  %v423_v48 = vmul.f32 0.01, %v288_v44  ;;  %v292_v50 = vpop.f32.mrb[3].mxu0  ;;  %v330_v59 = vpop.f32.mrb[1].mxu1 }
  0xe9   :  { %vm417_vm3 = vcmp.ge.f32.partialorder %v290_v46, 0.0  ;;  %v424_v51 = vmul.f32 0.01, %v290_v46  ;;  %v331_v61 = vadd.f32 %v330_v59, %v85_v53  ;;  %v332_v62 = vpop.f32.mrb[2].mxu1  ;;  %v2857_v47 = vld [vmem:[%s4000_s3 + $0x2ec] ss:$16 sps:$4 sm:$0xff]  }
  0xea   :  { %v430_v54 = vsel %vm416_vm2, %v288_v44, %v423_v48  ;;  %v333_v3 = vpop.f32.mrb[3].mxu1  ;;  %v2846_v44 = vld [vmem:[%s4000_s3 + $0x2c0] ss:$16 sps:$4 sm:$0xff]   ;;  %v2860_v50 = vld [vmem:[%s4000_s3 + $0x304] ss:$16 sps:$4 sm:$0xff]  }
  0xeb   :  { %v444_v55 = vmul.f32 %v437_v49, %v430_v54  ;;  %v431_v56 = vsel %vm417_vm3, %v290_v46, %v424_v51  ;;  %vm419_vm4 = vcmp.ge.f32.partialorder %v331_v61, 0.0  ;;  %v426_v6 = vmul.f32 0.01, %v331_v61  ;;  %v2854_v46 = vld [vmem:[%s4000_s3 + $0x2e4] ss:$16 sps:$4 sm:$0xff]  }
  0xec   :  { %v445_v58 = vmul.f32 %v438_v52, %v431_v56  ;;  %v2852_v48 = vld [vmem:[%s4000_s3 + $0x2e0] ss:$16 sps:$4 sm:$0xff]   ;;  %v2855_v49 = vld [vmem:[%s4000_s3 + $0x2e8] ss:$16 sps:$4 sm:$0xff]   ;;  %v2863_v51 = vld [vmem:[%s4000_s3 + $0x30c] ss:$16 sps:$4 sm:$0xff]  }
  0xed   :  { %v451_v4 = vpack.c.bf16 %v444_v55, %v444_v55  ;;  %v433_v8 = vsel %vm419_vm4, %v331_v61, %v426_v6  ;;  %v2858_v52 = vld [vmem:[%s4000_s3 + $0x300] ss:$16 sps:$4 sm:$0xff]   ;;  %v2861_v53 = vld [vmem:[%s4000_s3 + $0x308] ss:$16 sps:$4 sm:$0xff]   ;;  %v2866_v54 = vld [vmem:[%s4000_s3 + $0x324] ss:$16 sps:$4 sm:$0xff]  }
  0xee   :  { %v452_v63 = vpack.c.bf16 %v445_v58, %v445_v58  ;;  %v447_v11 = vmul.f32 %v440_v7, %v433_v8  ;;  %v2869_v55 = vld [vmem:[%s4000_s3 + $0x32c] ss:$16 sps:$4 sm:$0xff]   ;;  %v2864_v56 = vld [vmem:[%s4000_s3 + $0x320] ss:$16 sps:$4 sm:$0xff]   ;;  %v2867_v58 = vld [vmem:[%s4000_s3 + $0x328] ss:$16 sps:$4 sm:$0xff]  }
  0xef   :  { %v2872_v59 = vld [vmem:[%s4000_s3 + $0x344] ss:$16 sps:$4 sm:$0xff]   ;;  %v2870_v61 = vld [vmem:[%s4000_s3 + $0x340] ss:$16 sps:$4 sm:$0xff]   ;;  %v2873_v62 = vld [vmem:[%s4000_s3 + $0x348] ss:$16 sps:$4 sm:$0xff]  }
  0xf0   :  { %1716 = vmatprep.mubr.bf16.mxu0 %v452_v63  ;;  %1880 = vmatprep.mubr.bf16.mxu1 %v452_v63  ;;  %v454_v14 = vpack.c.bf16 %v447_v11, %v447_v11  ;;  %v2878_v63 = vld [vmem:[%s4000_s3 + $0x364] ss:$16 sps:$4 sm:$0xff]   ;;  %v92_v3 = vsub.s32 5, %v3409_v36  ;;  %v2887_v7 = vld [vmem:[%s4000_s3 + $0x38c] ss:$16 sps:$4 sm:$0xff]  }
  0xf1   :  { %1717 = vmatmul.mubr.bf16.vlgmr.msra.gmra.mrb[8].mxu0 %v451_v4  ;;  %1881 = vmatmul.mubr.bf16.vlgmr.msra.gmra.mrb[8].mxu1 %v451_v4  ;;  %v2876_v4 = vld [vmem:[%s4000_s3 + $0x360] ss:$16 sps:$4 sm:$0xff]   ;;  %v2884_v6 = vld [vmem:[%s4000_s3 + $0x384] ss:$16 sps:$4 sm:$0xff]   ;;  %v2885_v11 = vld [vmem:[%s4000_s3 + $0x388] ss:$16 sps:$4 sm:$0xff]  }
  0xf2   :  { %1726 = vmatpush1.bf16.msra.mxu0 %v2810_v60  ;;  %1890 = vmatpush1.bf16.msra.mxu1 %v2813_v0  ;;  %v2875_v60 = vld [vmem:[%s4000_s3 + $0x34c] ss:$16 sps:$4 sm:$0xff]  }
  0xf3   :  { %1727 = vmatprep.subr.bf16.mxu0 %v2818_v1  ;;  %1891 = vmatprep.subr.bf16.mxu1 %v2821_v5  ;;  %v2881_v0 = vld [vmem:[%s4000_s3 + $0x36c] ss:$16 sps:$4 sm:$0xff]   ;;  %v80_v1 = vsub.s32 2, %v3409_v36  ;;  %v2879_v5 = vld [vmem:[%s4000_s3 + $0x368] ss:$16 sps:$4 sm:$0xff]  }
  0xf4   :  { %1757 = vmatprep.mubr.bf16.mxu0 %v454_v14  ;;  %1921 = vmatprep.mubr.bf16.mxu1 %v454_v14 }
  0xf5   :  { %v3463_v15 = vpop.f32.mrb[4].mxu0  ;;  %v81_v8 = vrot.slane %v3415_v38, %v80_v1 }
  0xf6   :  { %1728 = vmatpush1.bf16.msra.mxu0 %v2816_v9  ;;  %1892 = vmatpush1.bf16.msra.mxu1 %v2819_v10  ;;  %v3471_v18 = vpop.f32.mrb[5].mxu0  ;;  %v93_v9 = vrot.slane %v3415_v38, %v92_v3  ;;  %v2882_v10 = vld [vmem:[%s4000_s3 + $0x380] ss:$16 sps:$4 sm:$0xff]  }
  0xf7   :  { %1729 = vmatprep.subr.bf16.mxu0 %v2824_v12  ;;  %1893 = vmatprep.subr.bf16.mxu1 %v2827_v13  ;;  %v373_v21 = vpop.f32.mrb[6].mxu0  ;;  %v3491_v27 = vpop.f32.mrb[4].mxu1  ;;  %v2890_v12 = vld [vmem:[%s4000_s3 + $0x3a4] ss:$16 sps:$4 sm:$0xff]   ;;  %v2893_v13 = vld [vmem:[%s4000_s3 + $0x3ac] ss:$16 sps:$4 sm:$0xff]   ;;  %v329_v14 = vadd.f32 %v3434_v57, %v81_v8 }
  0xf8   :  { %v374_v22 = vpop.f32.mrb[7].mxu0  ;;  %v2640_v28 = vpop.f32.mrb[5].mxu1  ;;  %v2899_v57 = vld [vmem:[%s4000_s3 + $0x3cc] ss:$16 sps:$4 sm:$0xff]   ;;  %v2936_v3 = vld [vmem:[%s4000_s3 + $0x4a0] ss:$16 sps:$4 sm:$0xff]  }
  0xf9   :  { %v413_v29 = vpop.f32.mrb[6].mxu1  ;;  %vm418_vm5 = vcmp.ge.f32.partialorder %v329_v14, 0.0  ;;  %v2894_v22 = vld [vmem:[%s4000_s3 + $0x3c0] ss:$16 sps:$4 sm:$0xff]   ;;  %v2945_v8 = vld [vmem:[%s4000_s3 + $0x4c8] ss:$16 sps:$4 sm:$0xff]  }
  0xfa   :  { %1730 = vmatpush1.bf16.msra.mxu0 %v2822_v16  ;;  %1894 = vmatpush1.bf16.msra.mxu1 %v2825_v17  ;;  %v2641_v32 = vpop.f32.mrb[7].mxu1  ;;  %v372_v16 = vadd.f32 %v3471_v18, %v93_v9  ;;  %v2888_v17 = vld [vmem:[%s4000_s3 + $0x3a0] ss:$16 sps:$4 sm:$0xff]   ;;  %v425_v18 = vmul.f32 0.01, %v329_v14 }
  0xfb   :  { %1731 = vmatprep.subr.bf16.mxu0 %v2830_v19  ;;  %1895 = vmatprep.subr.bf16.mxu1 %v2833_v20  ;;  %v2891_v19 = vld [vmem:[%s4000_s3 + $0x3a8] ss:$16 sps:$4 sm:$0xff]   ;;  %v2896_v20 = vld [vmem:[%s4000_s3 + $0x3c4] ss:$16 sps:$4 sm:$0xff]  }
  0xfc   :  { %v428_v21 = vmul.f32 0.01, %v372_v16  ;;  %vm421_vm6 = vcmp.ge.f32.partialorder %v372_v16, 0.0  ;;  %v439_v28 = vld [vmem:[%s4004_s7 + $0x10] sm:$0xff]  ;;  %v2903_v32 = vld [vmem:[%s4000_s3 + $0x3e8] ss:$16 sps:$4 sm:$0xff]  }
  0xfd   :  { %v2950_v9 = vld [vmem:[%s4000_s3 + $0x4e4] ss:$16 sps:$4 sm:$0xff]  }
  0xfe   :  { %1732 = vmatpush1.bf16.msra.mxu0 %v2828_v23  ;;  %1896 = vmatpush1.bf16.msra.mxu1 %v2831_v24  ;;  %v2897_v23 = vld [vmem:[%s4000_s3 + $0x3c8] ss:$16 sps:$4 sm:$0xff]   ;;  %v2902_v24 = vld [vmem:[%s4000_s3 + $0x3e4] ss:$16 sps:$4 sm:$0xff]   ;;  %v435_v29 = vsel %vm421_vm6, %v372_v16, %v428_v21  ;;  %v2954_v16 = vld [vmem:[%s4000_s3 + $0x500] ss:$16 sps:$4 sm:$0xff]  }
  0xff   :  { %1733 = vmatprep.subr.bf16.mxu0 %v2836_v25  ;;  %1897 = vmatprep.subr.bf16.mxu1 %v2839_v26  ;;  %v2905_v25 = vld [vmem:[%s4000_s3 + $0x3ec] ss:$16 sps:$4 sm:$0xff]   ;;  %v432_v26 = vsel %vm418_vm5, %v329_v14, %v425_v18  ;;  %v2963_v18 = vld [vmem:[%s4000_s3 + $0x528] ss:$16 sps:$4 sm:$0xff]   ;;  %v2968_v21 = vld [vmem:[%s4000_s3 + $0x544] ss:$16 sps:$4 sm:$0xff]  }
 0x100   :  { %v2959_v14 = vld [vmem:[%s4000_s3 + $0x50c] ss:$16 sps:$4 sm:$0xff]  }
 0x102   :  { %1734 = vmatpush1.bf16.msra.mxu0 %v2834_v30  ;;  %1898 = vmatpush1.bf16.msra.mxu1 %v2837_v31  ;;  %v442_v30 = vld [vmem:[%s4004_s7 + $0x28] sm:$0xff]  ;;  %v2900_v31 = vld [vmem:[%s4000_s3 + $0x3e0] ss:$16 sps:$4 sm:$0xff]  }
 0x103   :  { %1735 = vmatprep.subr.bf16.mxu0 %v2842_v33  ;;  %1899 = vmatprep.subr.bf16.mxu1 %v2845_v34  ;;  %v446_v33 = vmul.f32 %v439_v28, %v432_v26  ;;  %v2908_v34 = vld [vmem:[%s4000_s3 + $0x404] ss:$16 sps:$4 sm:$0xff]   ;;  %v2977_v26 = vld [vmem:[%s4000_s3 + $0x56c] ss:$16 sps:$4 sm:$0xff]   ;;  %v88_v28 = vsub.s32 4, %v3409_v36 }
 0x106   :  { %1736 = vmatpush1.bf16.msra.mxu0 %v2840_v35  ;;  %1900 = vmatpush1.bf16.msra.mxu1 %v2843_v40  ;;  %v2911_v35 = vld [vmem:[%s4000_s3 + $0x40c] ss:$16 sps:$4 sm:$0xff]   ;;  %v449_v40 = vmul.f32 %v442_v30, %v435_v29  ;;  %v2972_v29 = vld [vmem:[%s4000_s3 + $0x560] ss:$16 sps:$4 sm:$0xff]   ;;  %v2975_v30 = vld [vmem:[%s4000_s3 + $0x568] ss:$16 sps:$4 sm:$0xff]  }
 0x107   :  { %1737 = vmatprep.subr.bf16.mxu0 %v2848_v41  ;;  %1901 = vmatprep.subr.bf16.mxu1 %v2851_v42  ;;  %v2906_v41 = vld [vmem:[%s4000_s3 + $0x400] ss:$16 sps:$4 sm:$0xff]   ;;  %v2909_v42 = vld [vmem:[%s4000_s3 + $0x408] ss:$16 sps:$4 sm:$0xff]  }
 0x10a   :  { %1738 = vmatpush1.bf16.msra.mxu0 %v2846_v44  ;;  %1902 = vmatpush1.bf16.msra.mxu1 %v2849_v45  ;;  %v453_v44 = vpack.c.bf16 %v446_v33, %v446_v33  ;;  %v2914_v45 = vld [vmem:[%s4000_s3 + $0x424] ss:$16 sps:$4 sm:$0xff]   ;;  %v89_v33 = vrot.slane %v3415_v38, %v88_v28  ;;  %v3030_v28 = vld [vmem:[%s4002_s5 + $0x68] sm:$0xff]  }
 0x10b   :  { %1739 = vmatprep.subr.bf16.mxu0 %v2854_v46  ;;  %1903 = vmatprep.subr.bf16.mxu1 %v2857_v47  ;;  %v2917_v46 = vld [vmem:[%s4000_s3 + $0x42c] ss:$16 sps:$4 sm:$0xff]   ;;  %v456_v47 = vpack.c.bf16 %v449_v40, %v449_v40  ;;  %v2986_v40 = vld [vmem:[%s4000_s3 + $0x5a4] ss:$16 sps:$4 sm:$0xff]  }
 0x10e   :  { %1740 = vmatpush1.bf16.msra.mxu0 %v2852_v48  ;;  %1904 = vmatpush1.bf16.msra.mxu1 %v2855_v49  ;;  %v2912_v48 = vld [vmem:[%s4000_s3 + $0x420] ss:$16 sps:$4 sm:$0xff]   ;;  %v2915_v49 = vld [vmem:[%s4000_s3 + $0x428] ss:$16 sps:$4 sm:$0xff]  }
 0x10f   :  { %1741 = vmatprep.subr.bf16.mxu0 %v2860_v50  ;;  %1905 = vmatprep.subr.bf16.mxu1 %v2863_v51  ;;  %v2920_v50 = vld [vmem:[%s4000_s3 + $0x444] ss:$16 sps:$4 sm:$0xff]   ;;  %v2923_v51 = vld [vmem:[%s4000_s3 + $0x44c] ss:$16 sps:$4 sm:$0xff]  }
 0x112   :  { %1742 = vmatpush1.bf16.msra.mxu0 %v2858_v52  ;;  %1906 = vmatpush1.bf16.msra.mxu1 %v2861_v53  ;;  %v2918_v52 = vld [vmem:[%s4000_s3 + $0x440] ss:$16 sps:$4 sm:$0xff]   ;;  %v2921_v53 = vld [vmem:[%s4000_s3 + $0x448] ss:$16 sps:$4 sm:$0xff]  }
 0x113   :  { %1743 = vmatprep.subr.bf16.mxu0 %v2866_v54  ;;  %1907 = vmatprep.subr.bf16.mxu1 %v2869_v55  ;;  %v2926_v54 = vld [vmem:[%s4000_s3 + $0x464] ss:$16 sps:$4 sm:$0xff]   ;;  %v2929_v55 = vld [vmem:[%s4000_s3 + $0x46c] ss:$16 sps:$4 sm:$0xff]  }
 0x116   :  { %1744 = vmatpush1.bf16.msra.mxu0 %v2864_v56  ;;  %1908 = vmatpush1.bf16.msra.mxu1 %v2867_v58  ;;  %v2924_v56 = vld [vmem:[%s4000_s3 + $0x460] ss:$16 sps:$4 sm:$0xff]   ;;  %v2927_v58 = vld [vmem:[%s4000_s3 + $0x468] ss:$16 sps:$4 sm:$0xff]  }
 0x117   :  { %1745 = vmatprep.subr.bf16.mxu0 %v2872_v59  ;;  %1909 = vmatprep.subr.bf16.mxu1 %v2875_v60  ;;  %v2932_v59 = vld [vmem:[%s4000_s3 + $0x484] ss:$16 sps:$4 sm:$0xff]   ;;  %v2935_v60 = vld [vmem:[%s4000_s3 + $0x48c] ss:$16 sps:$4 sm:$0xff]  }
 0x11a   :  { %1746 = vmatpush1.bf16.msra.mxu0 %v2870_v61  ;;  %1910 = vmatpush1.bf16.msra.mxu1 %v2873_v62  ;;  %v2930_v61 = vld [vmem:[%s4000_s3 + $0x480] ss:$16 sps:$4 sm:$0xff]   ;;  %v2933_v62 = vld [vmem:[%s4000_s3 + $0x488] ss:$16 sps:$4 sm:$0xff]  }
 0x11b   :  { %1747 = vmatprep.subr.bf16.mxu0 %v2878_v63  ;;  %1911 = vmatprep.subr.bf16.mxu1 %v2881_v0  ;;  %v2938_v63 = vld [vmem:[%s4000_s3 + $0x4a4] ss:$16 sps:$4 sm:$0xff]   ;;  %v2941_v0 = vld [vmem:[%s4000_s3 + $0x4ac] ss:$16 sps:$4 sm:$0xff]  }
 0x11e   :  { %1748 = vmatpush1.bf16.msra.mxu0 %v2876_v4  ;;  %1912 = vmatpush1.bf16.msra.mxu1 %v2879_v5  ;;  %v2939_v4 = vld [vmem:[%s4000_s3 + $0x4a8] ss:$16 sps:$4 sm:$0xff]   ;;  %v2944_v5 = vld [vmem:[%s4000_s3 + $0x4c4] ss:$16 sps:$4 sm:$0xff]  }
 0x11f   :  { %1749 = vmatprep.subr.bf16.mxu0 %v2884_v6  ;;  %1913 = vmatprep.subr.bf16.mxu1 %v2887_v7  ;;  %v2947_v6 = vld [vmem:[%s4000_s3 + $0x4cc] ss:$16 sps:$4 sm:$0xff]   ;;  %v2942_v7 = vld [vmem:[%s4000_s3 + $0x4c0] ss:$16 sps:$4 sm:$0xff]  }
 0x122   :  { %1750 = vmatpush1.bf16.msra.mxu0 %v2882_v10  ;;  %1914 = vmatpush1.bf16.msra.mxu1 %v2885_v11  ;;  %v2953_v10 = vld [vmem:[%s4000_s3 + $0x4ec] ss:$16 sps:$4 sm:$0xff]   ;;  %v2948_v11 = vld [vmem:[%s4000_s3 + $0x4e0] ss:$16 sps:$4 sm:$0xff]  }
 0x123   :  { %1751 = vmatprep.subr.bf16.mxu0 %v2890_v12  ;;  %1915 = vmatprep.subr.bf16.mxu1 %v2893_v13  ;;  %v2951_v12 = vld [vmem:[%s4000_s3 + $0x4e8] ss:$16 sps:$4 sm:$0xff]   ;;  %v2956_v13 = vld [vmem:[%s4000_s3 + $0x504] ss:$16 sps:$4 sm:$0xff]  }
 0x126   :  { %1752 = vmatpush1.bf16.msra.mxu0 %v2888_v17  ;;  %1916 = vmatpush1.bf16.msra.mxu1 %v2891_v19  ;;  %v2957_v17 = vld [vmem:[%s4000_s3 + $0x508] ss:$16 sps:$4 sm:$0xff]   ;;  %v2962_v19 = vld [vmem:[%s4000_s3 + $0x524] ss:$16 sps:$4 sm:$0xff]  }
 0x127   :  { %1753 = vmatprep.subr.bf16.mxu0 %v2896_v20  ;;  %1917 = vmatprep.subr.bf16.mxu1 %v2899_v57  ;;  %v2965_v20 = vld [vmem:[%s4000_s3 + $0x52c] ss:$16 sps:$4 sm:$0xff]   ;;  %v2960_v57 = vld [vmem:[%s4000_s3 + $0x520] ss:$16 sps:$4 sm:$0xff]  }
 0x12a   :  { %1754 = vmatpush1.bf16.msra.mxu0 %v2894_v22  ;;  %1918 = vmatpush1.bf16.msra.mxu1 %v2897_v23  ;;  %v2971_v22 = vld [vmem:[%s4000_s3 + $0x54c] ss:$16 sps:$4 sm:$0xff]   ;;  %v2966_v23 = vld [vmem:[%s4000_s3 + $0x540] ss:$16 sps:$4 sm:$0xff]  }
 0x12b   :  { %1755 = vmatprep.subr.bf16.mxu0 %v2902_v24  ;;  %1919 = vmatprep.subr.bf16.mxu1 %v2905_v25  ;;  %v2969_v24 = vld [vmem:[%s4000_s3 + $0x548] ss:$16 sps:$4 sm:$0xff]   ;;  %v2974_v25 = vld [vmem:[%s4000_s3 + $0x564] ss:$16 sps:$4 sm:$0xff]  }
 0x12e   :  { %1756 = vmatpush1.bf16.msra.mxu0 %v2900_v31  ;;  %1920 = vmatpush1.bf16.msra.mxu1 %v2903_v32  ;;  %v2980_v31 = vld [vmem:[%s4000_s3 + $0x584] ss:$16 sps:$4 sm:$0xff]   ;;  %v2983_v32 = vld [vmem:[%s4000_s3 + $0x58c] ss:$16 sps:$4 sm:$0xff]  }
 0x12f   :  { %1766 = vmatprep.subr.bf16.mxu0 %v2908_v34  ;;  %1930 = vmatprep.subr.bf16.mxu1 %v2911_v35  ;;  %v2978_v34 = vld [vmem:[%s4000_s3 + $0x580] ss:$16 sps:$4 sm:$0xff]   ;;  %v2981_v35 = vld [vmem:[%s4000_s3 + $0x588] ss:$16 sps:$4 sm:$0xff]  }
 0x131   :  { %1758 = vmatmul.mubr.bf16.vlgmr.msra.gmra.mrb[8].mxu0 %v453_v44  ;;  %1922 = vmatmul.mubr.bf16.vlgmr.msra.gmra.mrb[8].mxu1 %v453_v44  ;;  %v2984_v44 = vld [vmem:[%s4000_s3 + $0x5a0] ss:$16 sps:$4 sm:$0xff]  }
 0x132   :  { %1767 = vmatpush1.bf16.msra.mxu0 %v2906_v41  ;;  %1931 = vmatpush1.bf16.msra.mxu1 %v2909_v42  ;;  %v2989_v41 = vld [vmem:[%s4000_s3 + $0x5ac] ss:$16 sps:$4 sm:$0xff]   ;;  %v370_v42 = vadd.f32 %v3463_v15, %v89_v33 }
 0x133   :  { %1768 = vmatprep.subr.bf16.mxu0 %v2914_v45  ;;  %1932 = vmatprep.subr.bf16.mxu1 %v2917_v46  ;;  %v2987_v45 = vld [vmem:[%s4000_s3 + $0x5a8] ss:$16 sps:$4 sm:$0xff]   ;;  %v2992_v46 = vld [vmem:[%s4000_s3 + $0x5c4] ss:$16 sps:$4 sm:$0xff]   ;;  %v2995_v15 = vld [vmem:[%s4000_s3 + $0x5cc] ss:$16 sps:$4 sm:$0xff]  }
 0x134   :  { %1798 = vmatprep.mubr.bf16.mxu0 %v456_v47  ;;  %1962 = vmatprep.mubr.bf16.mxu1 %v456_v47  ;;  %v427_v47 = vmul.f32 0.01, %v370_v42  ;;  %vm420_vm7 = vcmp.ge.f32.partialorder %v370_v42, 0.0  ;;  %v3035_v33 = vld [vmem:[%s4002_s5 + $0xb8] sm:$0xff]  }
 0x136   :  { %1769 = vmatpush1.bf16.msra.mxu0 %v2912_v48  ;;  %1933 = vmatpush1.bf16.msra.mxu1 %v2915_v49  ;;  %v96_v48 = vsub.s32 6, %v3409_v36  ;;  %v2990_v49 = vld [vmem:[%s4000_s3 + $0x5c0] ss:$16 sps:$4 sm:$0xff]   ;;  %v2027_v36 = vld [vmem:[%s4005_s8 + $0x18] sm:$0xff] }
 0x137   :  { %1770 = vmatprep.subr.bf16.mxu0 %v2920_v50  ;;  %1934 = vmatprep.subr.bf16.mxu1 %v2923_v51  ;;  %v2993_v50 = vld [vmem:[%s4000_s3 + $0x5c8] ss:$16 sps:$4 sm:$0xff]   ;;  %v2998_v51 = vld [vmem:[%s4000_s3 + $0x5e4] ss:$16 sps:$4 sm:$0xff]  }
 0x13a   :  { %1771 = vmatpush1.bf16.msra.mxu0 %v2918_v52  ;;  %1935 = vmatpush1.bf16.msra.mxu1 %v2921_v53  ;;  %v3001_v52 = vld [vmem:[%s4000_s3 + $0x5ec] ss:$16 sps:$4 sm:$0xff]   ;;  %v434_v53 = vsel %vm420_vm7, %v370_v42, %v427_v47 }
 0x13b   :  { %1772 = vmatprep.subr.bf16.mxu0 %v2926_v54  ;;  %1936 = vmatprep.subr.bf16.mxu1 %v2929_v55  ;;  %v441_v54 = vld [vmem:[%s4004_s7 + $0x20] sm:$0xff]  ;;  %v97_v55 = vrot.slane %v3415_v38, %v96_v48  ;;  %v3007_v38 = vld [vmem:[%s4000_s3 + $0x60c] ss:$16 sps:$4 sm:$0xff]  }
 0x13c   :  { %v2024_v48 = vld [vmem:[%s4005_s8] sm:$0xff] }
 0x13e   :  { %1773 = vmatpush1.bf16.msra.mxu0 %v2924_v56  ;;  %1937 = vmatpush1.bf16.msra.mxu1 %v2927_v58  ;;  %v2996_v56 = vld [vmem:[%s4000_s3 + $0x5e0] ss:$16 sps:$4 sm:$0xff]   ;;  %v2999_v58 = vld [vmem:[%s4000_s3 + $0x5e8] ss:$16 sps:$4 sm:$0xff]  }
 0x13f   :  { %1774 = vmatprep.subr.bf16.mxu0 %v2932_v59  ;;  %1938 = vmatprep.subr.bf16.mxu1 %v2935_v60  ;;  %v448_v59 = vmul.f32 %v441_v54, %v434_v53  ;;  %v3004_v60 = vld [vmem:[%s4000_s3 + $0x604] ss:$16 sps:$4 sm:$0xff]   ;;  %v2025_v53 = vld [vmem:[%s4005_s8 + $0x8] sm:$0xff] }
 0x142   :  { %1775 = vmatpush1.bf16.msra.mxu0 %v2930_v61  ;;  %1939 = vmatpush1.bf16.msra.mxu1 %v2933_v62  ;;  %v411_v61 = vadd.f32 %v3491_v27, %v97_v55  ;;  %v3002_v62 = vld [vmem:[%s4000_s3 + $0x600] ss:$16 sps:$4 sm:$0xff]   ;;  %v3013_v27 = vld [vmem:[%s4000_s3 + $0x62c] ss:$16 sps:$4 sm:$0xff]  }
 0x143   :  { %1776 = vmatprep.subr.bf16.mxu0 %v2938_v63  ;;  %1940 = vmatprep.subr.bf16.mxu1 %v2941_v0  ;;  %v3005_v63 = vld [vmem:[%s4000_s3 + $0x608] ss:$16 sps:$4 sm:$0xff]   ;;  %v455_v0 = vpack.c.bf16 %v448_v59, %v448_v59 }
 0x144   :  { %vm422_vm8 = vcmp.ge.f32.partialorder %v411_v61, 0.0 }
 0x146   :  { %1777 = vmatpush1.bf16.msra.mxu0 %v2936_v3  ;;  %1941 = vmatpush1.bf16.msra.mxu1 %v2939_v4  ;;  %v3010_v3 = vld [vmem:[%s4000_s3 + $0x624] ss:$16 sps:$4 sm:$0xff]   ;;  %v429_v4 = vmul.f32 0.01, %v411_v61 }
 0x147   :  { %1778 = vmatprep.subr.bf16.mxu0 %v2944_v5  ;;  %1942 = vmatprep.subr.bf16.mxu1 %v2947_v6  ;;  %v3008_v5 = vld [vmem:[%s4000_s3 + $0x620] ss:$16 sps:$4 sm:$0xff]   ;;  %v3011_v6 = vld [vmem:[%s4000_s3 + $0x628] ss:$16 sps:$4 sm:$0xff]  }
 0x14a   :  { %1779 = vmatpush1.bf16.msra.mxu0 %v2942_v7  ;;  %1943 = vmatpush1.bf16.msra.mxu1 %v2945_v8  ;;  %v3015_v7 = vld [vmem:[%s4002_s5 + $0x40] sm:$0xff]   ;;  %v436_v8 = vsel %vm422_vm8, %v411_v61, %v429_v4 }
 0x14b   :  { %1780 = vmatprep.subr.bf16.mxu0 %v2950_v9  ;;  %1944 = vmatprep.subr.bf16.mxu1 %v2953_v10  ;;  %v443_v9 = vld [vmem:[%s4004_s7 + $0x30] sm:$0xff] }
 0x14c   :  { %v450_v10 = vmul.f32 %v443_v9, %v436_v8 }
 0x14e   :  { %1781 = vmatpush1.bf16.msra.mxu0 %v2948_v11  ;;  %1945 = vmatpush1.bf16.msra.mxu1 %v2951_v12  ;;  %v3014_v11 = vld [vmem:[%s4002_s5 + $0x80] sm:$0xff]  }
 0x14f   :  { %1782 = vmatprep.subr.bf16.mxu0 %v2956_v13  ;;  %1946 = vmatprep.subr.bf16.mxu1 %v2959_v14  ;;  %v3016_v12 = vld [vmem:[%s4002_s5] sm:$0xff]   ;;  %v457_v13 = vpack.c.bf16 %v450_v10, %v450_v10  ;;  %v3018_v14 = vld [vmem:[%s4002_s5 + $0x48] sm:$0xff]  }
 0x152   :  { %1783 = vmatpush1.bf16.msra.mxu0 %v2954_v16  ;;  %1947 = vmatpush1.bf16.msra.mxu1 %v2957_v17  ;;  %v3017_v16 = vld [vmem:[%s4002_s5 + $0x88] sm:$0xff]  }
 0x153   :  { %1784 = vmatprep.subr.bf16.mxu0 %v2962_v19  ;;  %1948 = vmatprep.subr.bf16.mxu1 %v2965_v20  ;;  %v3019_v17 = vld [vmem:[%s4002_s5 + $0x8] sm:$0xff]   ;;  %v3021_v19 = vld [vmem:[%s4002_s5 + $0x50] sm:$0xff]  }
 0x154   :  { %v3020_v20 = vld [vmem:[%s4002_s5 + $0x90] sm:$0xff]  }
 0x156   :  { %1785 = vmatpush1.bf16.msra.mxu0 %v2960_v57  ;;  %1949 = vmatpush1.bf16.msra.mxu1 %v2963_v18  ;;  %v3022_v57 = vld [vmem:[%s4002_s5 + $0x10] sm:$0xff]   ;;  %v3024_v18 = vld [vmem:[%s4002_s5 + $0x58] sm:$0xff]  }
 0x157   :  { %1786 = vmatprep.subr.bf16.mxu0 %v2968_v21  ;;  %1950 = vmatprep.subr.bf16.mxu1 %v2971_v22  ;;  %v3023_v21 = vld [vmem:[%s4002_s5 + $0x98] sm:$0xff]  }
 0x158   :  { %v3025_v22 = vld [vmem:[%s4002_s5 + $0x18] sm:$0xff]  }
 0x15a   :  { %1787 = vmatpush1.bf16.msra.mxu0 %v2966_v23  ;;  %1951 = vmatpush1.bf16.msra.mxu1 %v2969_v24  ;;  %v3027_v23 = vld [vmem:[%s4002_s5 + $0x60] sm:$0xff]  }
 0x15b   :  { %1788 = vmatprep.subr.bf16.mxu0 %v2974_v25  ;;  %1952 = vmatprep.subr.bf16.mxu1 %v2977_v26  ;;  %v3026_v24 = vld [vmem:[%s4002_s5 + $0xa0] sm:$0xff]   ;;  %v3029_v26 = vld [vmem:[%s4002_s5 + $0xa8] sm:$0xff]  }
 0x15c   :  { %v3028_v25 = vld [vmem:[%s4002_s5 + $0x20] sm:$0xff]  }
 0x15e   :  { %1789 = vmatpush1.bf16.msra.mxu0 %v2972_v29  ;;  %1953 = vmatpush1.bf16.msra.mxu1 %v2975_v30  ;;  %v3031_v29 = vld [vmem:[%s4002_s5 + $0x28] sm:$0xff]   ;;  %v3032_v30 = vld [vmem:[%s4002_s5 + $0xb0] sm:$0xff]  }
 0x15f   :  { %1790 = vmatprep.subr.bf16.mxu0 %v2980_v31  ;;  %1954 = vmatprep.subr.bf16.mxu1 %v2983_v32  ;;  %v3033_v31 = vld [vmem:[%s4002_s5 + $0x70] sm:$0xff]  }
 0x160   :  { %v3034_v32 = vld [vmem:[%s4002_s5 + $0x30] sm:$0xff]  }
 0x162   :  { %1791 = vmatpush1.bf16.msra.mxu0 %v2978_v34  ;;  %1955 = vmatpush1.bf16.msra.mxu1 %v2981_v35  ;;  %v3036_v34 = vld [vmem:[%s4002_s5 + $0x78] sm:$0xff]  }
 0x163   :  { %1792 = vmatprep.subr.bf16.mxu0 %v2986_v40  ;;  %1956 = vmatprep.subr.bf16.mxu1 %v2989_v41  ;;  %v3037_v35 = vld [vmem:[%s4002_s5 + $0x38] sm:$0xff]   ;;  %v3038_v40 = vld [vmem:[%s4002_s5 + $0xc0] sm:$0xff]  }
 0x164   :  { %v658_v41 = vld [vmem:[%s4001_s4] sm:$0xf] }
 0x165   :  { %v663_v42 = vrot.slane %v658_v41, %v72_v37  ;;  %v2026_v37 = vld [vmem:[%s4005_s8 + $0x10] sm:$0xff] }
 0x166   :  { %1793 = vmatpush1.bf16.msra.mxu0 %v2984_v44  ;;  %1957 = vmatpush1.bf16.msra.mxu1 %v2987_v45  ;;  %v667_v44 = vrot.slane %v658_v41, %v76_v39  ;;  %v675_v45 = vrot.slane %v658_v41, %v84_v43 }
 0x167   :  { %1794 = vmatprep.subr.bf16.mxu0 %v2992_v46  ;;  %1958 = vmatprep.subr.bf16.mxu1 %v2995_v15 }
 0x16a   :  { %1795 = vmatpush1.bf16.msra.mxu0 %v2990_v49  ;;  %1959 = vmatpush1.bf16.msra.mxu1 %v2993_v50 }
 0x16b   :  { %1796 = vmatprep.subr.bf16.mxu0 %v2998_v51  ;;  %1960 = vmatprep.subr.bf16.mxu1 %v3001_v52 }
 0x16e   :  { %1797 = vmatpush1.bf16.msra.mxu0 %v2996_v56  ;;  %1961 = vmatpush1.bf16.msra.mxu1 %v2999_v58 }
 0x16f   :  { %1807 = vmatprep.subr.bf16.mxu0 %v3004_v60  ;;  %1971 = vmatprep.subr.bf16.mxu1 %v3007_v38 }
 0x171   :  { %1799 = vmatmul.mubr.bf16.vlgmr.msra.gmra.mrb[8].mxu0 %v455_v0  ;;  %1963 = vmatmul.mubr.bf16.vlgmr.msra.gmra.mrb[8].mxu1 %v455_v0 }
 0x172   :  { %1808 = vmatpush1.bf16.msra.mxu0 %v3002_v62  ;;  %1972 = vmatpush1.bf16.msra.mxu1 %v3005_v63 }
 0x173   :  { %1809 = vmatprep.subr.bf16.mxu0 %v3010_v3  ;;  %1973 = vmatprep.subr.bf16.mxu1 %v3013_v27 }
 0x174   :  { %1839 = vmatprep.mubr.bf16.mxu0 %v3063_v2  ;;  %2003 = vmatprep.mubr.bf16.mxu1 %v3063_v2 }
 0x176   :  { %1810 = vmatpush1.bf16.msra.mxu0 %v3008_v5  ;;  %1974 = vmatpush1.bf16.msra.mxu1 %v3011_v6 }
 0x177   :  { %2287 = vmatprep.subr.bf16.mxu1 %v3063_v2  ;;  %2608 = vmatprep.subr.bf16.mxu0 %v3015_v7 }
 0x17d   :  { %2574 = vmatmul.mubr.msk.bf16.vlgmr.msra.gmra.mrb[8].mxu0 %vm1680_vm9, %v457_v13  ;;  %2575 = vmatmul.mubr.msk.bf16.vlgmr.msra.gmra.mrb[8].mxu1 %vm1680_vm9, %v457_v13 }
 0x17e   :  { %2288 = vmatpush1.bf16.msra.mxu1 %v3014_v11  ;;  %2609 = vmatpush3.bf16.msra.mxu0 %v3016_v12  ;;  %v2576_v11 = vld [vmem:[%s4003_s6] ss:$0 sm:$0xff] }
 0x17f   :  { %2289 = vmatprep.subr.bf16.mxu1 %v3063_v2  ;;  %2610 = vmatprep.subr.bf16.mxu0 %v3018_v14 }
 0x182   :  { %2290 = vmatpush1.bf16.msra.mxu1 %v3017_v16  ;;  %2611 = vmatpush3.bf16.msra.mxu0 %v3019_v17 }
 0x183   :  { %2291 = vmatprep.subr.bf16.mxu1 %v3063_v2  ;;  %2612 = vmatprep.subr.bf16.mxu0 %v3021_v19 }
 0x186   :  { %2292 = vmatpush1.bf16.msra.mxu1 %v3020_v20  ;;  %2613 = vmatpush3.bf16.msra.mxu0 %v3022_v57 }
 0x187   :  { %2293 = vmatprep.subr.bf16.mxu1 %v3063_v2  ;;  %2614 = vmatprep.subr.bf16.mxu0 %v3024_v18 }
 0x18a   :  { %2294 = vmatpush1.bf16.msra.mxu1 %v3023_v21  ;;  %2615 = vmatpush3.bf16.msra.mxu0 %v3025_v22 }
 0x18b   :  { %2295 = vmatprep.subr.bf16.mxu1 %v3063_v2  ;;  %2616 = vmatprep.subr.bf16.mxu0 %v3027_v23 }
 0x18e   :  { %2296 = vmatpush1.bf16.msra.mxu1 %v3026_v24  ;;  %2617 = vmatpush3.bf16.msra.mxu0 %v3028_v25 }
 0x18f   :  { %2297 = vmatprep.subr.bf16.mxu1 %v3063_v2  ;;  %2618 = vmatprep.subr.bf16.mxu0 %v3030_v28 }
 0x192   :  { %2298 = vmatpush1.bf16.msra.mxu1 %v3029_v26  ;;  %2619 = vmatpush3.bf16.msra.mxu0 %v3031_v29 }
 0x193   :  { %2299 = vmatprep.subr.bf16.mxu1 %v3063_v2  ;;  %2620 = vmatprep.subr.bf16.mxu0 %v3033_v31 }
 0x196   :  { %2300 = vmatpush1.bf16.msra.mxu1 %v3032_v30  ;;  %2621 = vmatpush3.bf16.msra.mxu0 %v3034_v32 }
 0x197   :  { %2301 = vmatprep.subr.bf16.mxu1 %v3063_v2  ;;  %2622 = vmatprep.subr.bf16.mxu0 %v3036_v34 }
 0x19a   :  { %2302 = vmatpush1.bf16.msra.mxu1 %v3035_v33  ;;  %2623 = vmatpush3.bf16.msra.mxu0 %v3037_v35 }
 0x19b   :  { %2303 = vmatprep.subr.bf16.mxu1 %v3063_v2  ;;  %v671_v2 = vrot.slane %v658_v41, %v80_v1 }
 0x19e   :  { %2304 = vmatpush1.bf16.msra.mxu1 %v3038_v40 }
 0x250   :  { %v1841_v46 = vpop.f32.mrb[8].mxu0  ;;  %v2005_v15 = vpop.f32.mrb[8].mxu1 }
 0x251   :  { %v2642_v47 = vadd.f32 %v1841_v46, %v663_v42  ;;  %v2644_v49 = vadd.f32 %v2005_v15, %v671_v2  ;;  %v1843_v50 = vpop.f32.mrb[9].mxu0  ;;  %v2007_v51 = vpop.f32.mrb[9].mxu1 }
 0x252   :  { %v2643_v1 = vadd.f32 %v1843_v50, %v667_v44  ;;  %v2645_v52 = vadd.f32 %v2007_v51, %v675_v45  ;;  %v1845_v39 = vpop.f32.mrb[10].mxu0  ;;  %v2009_v43 = vpop.f32.mrb[10].mxu1 }
 0x253   :  { %vm2012_vm10 = vcmp.ge.f32.partialorder %v2642_v47, 0.0  ;;  %v2016_v54 = vmul.f32 0.01, %v2642_v47  ;;  %vm2014_vm11 = vcmp.ge.f32.partialorder %v2644_v49, 0.0  ;;  %v2018_v55 = vmul.f32 0.01, %v2644_v49 }
 0x254   :  { %vm2013_vm12 = vcmp.ge.f32.partialorder %v2643_v1, 0.0  ;;  %v2017_v56 = vmul.f32 0.01, %v2643_v1  ;;  %vm2015_vm13 = vcmp.ge.f32.partialorder %v2645_v52, 0.0  ;;  %v2019_v58 = vmul.f32 0.01, %v2645_v52 }
 0x255   :  { %v2020_v59 = vsel %vm2012_vm10, %v2642_v47, %v2016_v54  ;;  %v2022_v60 = vsel %vm2014_vm11, %v2644_v49, %v2018_v55  ;;  %v1846_v38 = vpop.f32.mrb[11].mxu0  ;;  %v2010_v61 = vpop.f32.mrb[11].mxu1 }
 0x256   :  { %v2028_v62 = vmul.f32 %v2024_v48, %v2020_v59  ;;  %v2030_v63 = vmul.f32 %v2026_v37, %v2022_v60  ;;  %v2021_v0 = vsel %vm2013_vm12, %v2643_v1, %v2017_v56  ;;  %v2023_v3 = vsel %vm2015_vm13, %v2645_v52, %v2019_v58 }
 0x257   :  { %v2031_v27 = vmul.f32 %v2027_v36, %v2023_v3  ;;  %v2029_v4 = vmul.f32 %v2025_v53, %v2021_v0 }
 0x258   :  { %v2032_v7 = vpack.c.bf16 %v2028_v62, %v2028_v62  ;;  %v2034_v8 = vpack.c.bf16 %v2030_v63, %v2030_v63 }
 0x259   :  { %v2035_v5 = vpack.c.bf16 %v2031_v27, %v2031_v27  ;;  %v2033_v6 = vpack.c.bf16 %v2029_v4, %v2029_v4 }
 0x25b   :  { %2279 = vmatprep.mubr.bf16.mxu0 %v2033_v6  ;;  %2602 = vmatprep.mubr.msk.bf16.mxu1 %vm2243_vm14, %v2035_v5 }
 0x25c   :  { %2280 = vmatmul.mubr.bf16.vlgmr.msra.gmra.mrb[12].mxu0 %v2032_v7  ;;  %2320 = vmatmul.mubr.bf16.vlgmr.msra.gmra.mrb[12].mxu1 %v2034_v8 }
 0x32f   :  { %v2624_v9 = vpop.f32.mrb[12].mxu0  ;;  %v2321_v10 = vpop.f32.mrb[12].mxu1 }
 0x330   :  { %v2625_v12 = vpop.f32.mrb[13].mxu0  ;;  %v2323_v13 = vpop.f32.mrb[13].mxu1 }
 0x331   :  { %v2626_v14 = vadd.f32 %v2625_v12, %v2624_v9  ;;  %v2627_v16 = vpop.f32.mrb[14].mxu0  ;;  %v2324_v17 = vpop.f32.mrb[14].mxu1 }
 0x332   :  { %v2628_v19 = vpop.f32.mrb[15].mxu0  ;;  %v2325_v20 = vpop.f32.mrb[15].mxu1 }
 0x333   :  { %v2282_v57 = vadd.f32 %v2626_v14, %v2576_v11 }
 0x335   :  { %v2322_v18 = vadd.f32 %v2321_v10, %v2282_v57 }
 0x337   :  { %2327 = vst [vmem:[#allocation2] sm:$0xff] %v2322_v18 }
 0x338   :  { %3050 = shalt.err (!%p3047_p4)
}
 0x339   :  { %s3051_s22 = scalar_lea.hbm %s4006_s9, 128 }
 0x33a   :  { %p3052_p5 = scmp.ne.s32.totalorder %s4006_s9, %s3051_s22  ;;  %p3055_p6 = scmp.lt.u32.totalorder %s3051_s22, %s4006_s9 }
 0x33c   :  { %p3057_p7 = pnand %p3055_p6, %p3052_p5 }
 0x33e   :  { %3060 = shalt.err (!%p3057_p7)
}
 0x33f   :  { %2337 = dma.vmem_to_hbm [thread:$0]  %s2335_s2, 128, %s4006_s9, [#allocation3]  }
 0x340   :  { %3061 = dma.done.wait [#allocation3], 128  }
 0x341   :  { %3062 = vsyncadd [#allocation3], 4294967168 }
 0x342   :  { %2341 = vsyncpa [#allocation3], 1 }

</bundles_post_ra>
